<compile_context>
chip_gen: v7x
topology: tpu7x:2x2x1
jax: 0.10.0
libtpu: 0.0.40
codegen_flags: <defaults>
</compile_context>

<pallas_src>
import functools

import jax
import jax.numpy as jnp
from jax.experimental import pallas as pl
from jax.experimental.pallas import tpu as pltpu

CLS_PAD = 128  # lane-dense classifier output width (real classes sliced in the wrapper)


# ----------------------------- Pallas kernel --------------------------------

def _fused_forward_kernel(pt_ref, wconv_ref, bconv_ref, wcls_ref, bcls_ref,
                          h_ref, out_ref):
    """Fused per-batch-element forward.

    pt_ref    : (1, C*k*k, H*W)    im2col patches (transposed) for this batch element
    wconv_ref : (C_out, C*k*k)     conv weight, PyTorch flatten order
    bconv_ref : (C_out, 1)         conv bias
    wcls_ref  : (C_out, H*W, 128)  classifier weight, permuted to activation layout, class-padded
    bcls_ref  : (1, 128)           classifier bias, class-padded
    h_ref     : (1, C_out, H*W)    embedding (collapses to torch.flatten order)
    out_ref   : (1, 1, 128)        logits, lane-dense (padded classes)
    """
    pt = pt_ref[0]                                              # (CKK, HW)

    # conv3x3(pad=1) as a single matmul in (C_out, HW) orientation + bias + ReLU
    y = jnp.dot(wconv_ref[...], pt, preferred_element_type=jnp.float32)
    y = jnp.maximum(y + bconv_ref[...], 0.0)                    # (C_out, HW)
    h_ref[0] = y.astype(h_ref.dtype)                            # torch.flatten order once collapsed

    # classifier: out[cls] = sum_{co,p} y[co, p] * wcls[co, p, cls] + b[cls]
    acc = bcls_ref[...].astype(jnp.float32)                     # (1, 128)
    c_out = wconv_ref.shape[0]
    for co in range(c_out):                                     # static unroll (8 small MXU dots)
        acc = acc + jnp.dot(y[co:co + 1, :], wcls_ref[co],
                            preferred_element_type=jnp.float32)
    out_ref[0] = acc.astype(out_ref.dtype)


def _fused_forward(pt, w_conv_flat, b_conv2, w_cls_t, b_cls_p):
    N, ckk, hw = pt.shape
    c_out = w_conv_flat.shape[0]
    return pl.pallas_call(
        _fused_forward_kernel,
        out_shape=(
            jax.ShapeDtypeStruct((N, c_out, hw), jnp.float32),   # h (per-channel rows)
            jax.ShapeDtypeStruct((N, 1, CLS_PAD), jnp.float32),  # logits, lane-dense
        ),
        grid_spec=pltpu.PrefetchScalarGridSpec(
            num_scalar_prefetch=0,
            grid=(N,),
            in_specs=[
                pl.BlockSpec((1, ckk, hw), lambda n: (n, 0, 0)),       # patches (per batch elem)
                pl.BlockSpec((c_out, ckk), lambda n: (0, 0)),          # conv weight (resident)
                pl.BlockSpec((c_out, 1), lambda n: (0, 0)),            # conv bias
                pl.BlockSpec((c_out, hw, CLS_PAD), lambda n: (0, 0, 0)),  # classifier weight
                pl.BlockSpec((1, CLS_PAD), lambda n: (0, 0)),          # classifier bias
            ],
            out_specs=[
                pl.BlockSpec((1, c_out, hw), lambda n: (n, 0, 0)),
                pl.BlockSpec((1, 1, CLS_PAD), lambda n: (n, 0, 0)),
            ],
        ),
        compiler_params=pltpu.CompilerParams(dimension_semantics=("parallel",)),
    )(pt, w_conv_flat, b_conv2, w_cls_t, b_cls_p)


# ------------------------------ JAX wrapper ----------------------------------

def prepare_params(params):
    """One-time weight layout plumbing (hoisted out of the per-call path)."""
    w_conv = params["w_conv"]                  # (C_out, C_in, 3, 3)
    b_conv = params["b_conv"]                  # (C_out,)
    w_cls = params["w_cls"]                    # (num_classes, C_out*H*W)
    b_cls = params["b_cls"]                    # (num_classes,)
    c_out = w_conv.shape[0]
    num_classes, feat = w_cls.shape
    hw = feat // c_out
    # classifier weight permuted to consume the kernel's (C_out, H*W) activation layout,
    # classes zero-padded to a lane-dense 128.
    w_cls_t = w_cls.reshape(num_classes, c_out, hw).transpose(1, 2, 0)   # (C_out, HW, ncls)
    w_cls_t = jnp.pad(w_cls_t, ((0, 0), (0, 0), (0, CLS_PAD - num_classes)))
    b_cls_p = jnp.pad(b_cls, (0, CLS_PAD - num_classes)).reshape(1, CLS_PAD)
    return {
        "w_conv_flat": w_conv.reshape(c_out, -1),   # (C_out, C_in*9), PyTorch flatten order
        "b_conv2": b_conv.reshape(c_out, 1),
        "w_cls_t": w_cls_t,
        "b_cls_p": b_cls_p,
    }


@functools.partial(jax.jit, static_argnames=("return_type", "num_classes"))
def combine_model_forward(x, prepped, return_type="output+embedding", num_classes=10):
    """Reproduces CombineModel.forward: h = encoder.features(x); h = flatten(h,1); out = cls(h)."""
    N, C, H, W = x.shape
    c_out = prepped["w_conv_flat"].shape[0]

    # im2col (transposed): pt[n, ci*9 + di*3 + dj, h*W + w] = xpad[n, ci, h+di, w+dj].
    # Built by XLA inside jit (fuses to one small producer); the matmuls run in the Pallas kernel.
    xpad = jnp.pad(x, ((0, 0), (0, 0), (1, 1), (1, 1)))
    taps = [xpad[:, :, di:di + H, dj:dj + W] for di in range(3) for dj in range(3)]
    pt = jnp.stack(taps, axis=2).reshape(N, C * 9, H * W)        # (N, C*9, H*W)

    h3, out_w = _fused_forward(pt, prepped["w_conv_flat"], prepped["b_conv2"],
                               prepped["w_cls_t"], prepped["b_cls_p"])

    h = h3.reshape(N, c_out * H * W)          # contiguous collapse == torch.flatten(NCHW, 1)
    out = out_w[:, 0, :num_classes]           # drop lane padding

    if return_type == "output+embedding":
        return (h, out)
    elif return_type == "output":
        return out
    else:
        raise ValueError()


def init_params(key, c_in=4, c_out=8, hw=16, num_classes=10):
    k1, k2, k3, k4 = jax.random.split(key, 4)
    feat_dim = c_out * hw * hw
    return {
        "w_conv": jax.random.normal(k1, (c_out, c_in, 3, 3), jnp.float32) * 0.05,
        "b_conv": jax.random.normal(k2, (c_out,), jnp.float32) * 0.05,
        "w_cls":  jax.random.normal(k3, (num_classes, feat_dim), jnp.float32) * 0.02,
        "b_cls":  jax.random.normal(k4, (num_classes,), jnp.float32) * 0.02,
    }


def _reference_forward(x, params):
    """Pure-JAX reference with HIGHEST precision for the correctness check."""
    y = jax.lax.conv_general_dilated(
        x, params["w_conv"], window_strides=(1, 1), padding=((1, 1), (1, 1)),
        dimension_numbers=("NCHW", "OIHW", "NCHW"),
        precision=jax.lax.Precision.HIGHEST)
    y = jnp.maximum(y + params["b_conv"][None, :, None, None], 0.0)
    h = y.reshape(x.shape[0], -1)
    out = jnp.dot(h, params["w_cls"].T, precision=jax.lax.Precision.HIGHEST) + params["b_cls"]
    return h, out


if __name__ == "__main__":
    key = jax.random.PRNGKey(0)
    k_x, k_p = jax.random.split(key)

    N, C, H, W = 2, 4, 16, 16
    num_classes = 10
    x = jax.random.normal(k_x, (N, C, H, W), jnp.float32)
    params = init_params(k_p, c_in=C, c_out=8, hw=H, num_classes=num_classes)
    prepped = prepare_params(params)

    h, out = combine_model_forward(x, prepped, return_type="output+embedding",
                                   num_classes=num_classes)
    jax.block_until_ready((h, out))

    assert h.shape == (N, 8 * H * W)
    assert out.shape == (N, num_classes)

    h_ref, out_ref = _reference_forward(x, params)
    assert bool(jnp.allclose(h, h_ref, atol=1e-2, rtol=1e-2))
    assert bool(jnp.allclose(out, out_ref, atol=1e-2, rtol=1e-2))

    print("KERNEL_OK")
</pallas_src>

<mosaic_0001>
module attributes {stable_mosaic.version = 11 : i64} {
  func.func @_fused_forward_kernel(%arg0: i32, %arg1: memref<1x36x256xf32, #tpu.memory_space<vmem>>, %arg2: memref<8x36xf32, #tpu.memory_space<vmem>>, %arg3: memref<8x1xf32, #tpu.memory_space<vmem>>, %arg4: memref<8x256x128xf32, #tpu.memory_space<vmem>>, %arg5: memref<1x128xf32, #tpu.memory_space<vmem>>, %arg6: memref<1x8x256xf32, #tpu.memory_space<vmem>>, %arg7: memref<1x1x128xf32, #tpu.memory_space<vmem>>) attributes {dimension_semantics = [#tpu.dimension_semantics<parallel>], iteration_bounds = array<i64: 2>, scalar_prefetch = 0 : i64, scratch_operands = 0 : i64, tpu.core_type = #tpu.core_type<tc>, window_params = [{transform_indices = @transform_0, window_bounds = array<i64: 1, 36, 256>}, {pipeline_mode = #tpu.pipeline_mode<synchronous>, transform_indices = @transform_1, window_bounds = array<i64: 8, 36>}, {pipeline_mode = #tpu.pipeline_mode<synchronous>, transform_indices = @transform_2, window_bounds = array<i64: 8, 1>}, {pipeline_mode = #tpu.pipeline_mode<synchronous>, transform_indices = @transform_3, window_bounds = array<i64: 8, 256, 128>}, {pipeline_mode = #tpu.pipeline_mode<synchronous>, transform_indices = @transform_4, window_bounds = array<i64: 1, 128>}, {transform_indices = @transform_5, window_bounds = array<i64: 1, 8, 256>}, {transform_indices = @transform_6, window_bounds = array<i64: 1, 1, 128>}]} {
    %c0 = arith.constant 0 : index
    %c0_0 = arith.constant 0 : index
    %c0_1 = arith.constant 0 : index
    %0 = vector.load %arg1[%c0, %c0_0, %c0_1] : memref<1x36x256xf32, #tpu.memory_space<vmem>>, vector<1x36x256xf32>
    %1 = vector.shape_cast %0 : vector<1x36x256xf32> to vector<36x256xf32>
    %c0_2 = arith.constant 0 : index
    %c0_3 = arith.constant 0 : index
    %2 = vector.load %arg2[%c0_2, %c0_3] : memref<8x36xf32, #tpu.memory_space<vmem>>, vector<8x36xf32>
    %cst = arith.constant dense<0.000000e+00> : vector<8x256xf32>
    %3 = tpu.matmul %2, %1, %cst {dimension_numbers = #tpu.dot_dimension_numbers<[1], [0], [0], [1], [0, 0, 1, 1], [], []>} : vector<8x36xf32>, vector<36x256xf32>, vector<8x256xf32> -> vector<8x256xf32>
    %c0_4 = arith.constant 0 : index
    %c0_5 = arith.constant 0 : index
    %4 = vector.load %arg3[%c0_4, %c0_5] : memref<8x1xf32, #tpu.memory_space<vmem>>, vector<8x1xf32>
    %5 = vector.broadcast %4 : vector<8x1xf32> to vector<8x256xf32>
    %6 = arith.addf %3, %5 : vector<8x256xf32>
    %cst_6 = arith.constant 0.000000e+00 : f32
    %7 = vector.broadcast %cst_6 : f32 to vector<8x256xf32>
    %8 = arith.maximumf %6, %7 : vector<8x256xf32>
    %c0_7 = arith.constant 0 : index
    %c0_8 = arith.constant 0 : index
    %c0_9 = arith.constant 0 : index
    %9 = vector.load %arg6[%c0_7, %c0_8, %c0_9] : memref<1x8x256xf32, #tpu.memory_space<vmem>>, vector<1x8x256xf32>
    %10 = vector.shape_cast %9 : vector<1x8x256xf32> to vector<8x256xf32>
    %11 = vector.shape_cast %8 : vector<8x256xf32> to vector<1x8x256xf32>
    tpu.vector_store %arg6[%c0_7, %c0_8, %c0_9], %11 {strides = array<i32>} : memref<1x8x256xf32, #tpu.memory_space<vmem>>, vector<1x8x256xf32>,
    %c0_10 = arith.constant 0 : index
    %c0_11 = arith.constant 0 : index
    %12 = vector.load %arg5[%c0_10, %c0_11] : memref<1x128xf32, #tpu.memory_space<vmem>>, vector<1x128xf32>
    %13 = vector.extract_strided_slice %8 {offsets = [0, 0], sizes = [1, 256], strides = [1, 1]} : vector<8x256xf32> to vector<1x256xf32>
    %c0_12 = arith.constant 0 : index
    %c0_13 = arith.constant 0 : index
    %c0_14 = arith.constant 0 : index
    %14 = vector.load %arg4[%c0_12, %c0_13, %c0_14] : memref<8x256x128xf32, #tpu.memory_space<vmem>>, vector<1x256x128xf32>
    %15 = vector.shape_cast %14 : vector<1x256x128xf32> to vector<256x128xf32>
    %cst_15 = arith.constant dense<0.000000e+00> : vector<1x128xf32>
    %16 = tpu.matmul %13, %15, %cst_15 {dimension_numbers = #tpu.dot_dimension_numbers<[1], [0], [0], [1], [0, 0, 1, 1], [], []>} : vector<1x256xf32>, vector<256x128xf32>, vector<1x128xf32> -> vector<1x128xf32>
    %17 = arith.addf %12, %16 : vector<1x128xf32>
    %18 = vector.extract_strided_slice %8 {offsets = [1, 0], sizes = [1, 256], strides = [1, 1]} : vector<8x256xf32> to vector<1x256xf32>
    %c1 = arith.constant 1 : index
    %c0_16 = arith.constant 0 : index
    %c0_17 = arith.constant 0 : index
    %19 = vector.load %arg4[%c1, %c0_16, %c0_17] : memref<8x256x128xf32, #tpu.memory_space<vmem>>, vector<1x256x128xf32>
    %20 = vector.shape_cast %19 : vector<1x256x128xf32> to vector<256x128xf32>
    %cst_18 = arith.constant dense<0.000000e+00> : vector<1x128xf32>
    %21 = tpu.matmul %18, %20, %cst_18 {dimension_numbers = #tpu.dot_dimension_numbers<[1], [0], [0], [1], [0, 0, 1, 1], [], []>} : vector<1x256xf32>, vector<256x128xf32>, vector<1x128xf32> -> vector<1x128xf32>
    %22 = arith.addf %17, %21 : vector<1x128xf32>
    %23 = vector.extract_strided_slice %8 {offsets = [2, 0], sizes = [1, 256], strides = [1, 1]} : vector<8x256xf32> to vector<1x256xf32>
    %c2 = arith.constant 2 : index
    %c0_19 = arith.constant 0 : index
    %c0_20 = arith.constant 0 : index
    %24 = vector.load %arg4[%c2, %c0_19, %c0_20] : memref<8x256x128xf32, #tpu.memory_space<vmem>>, vector<1x256x128xf32>
    %25 = vector.shape_cast %24 : vector<1x256x128xf32> to vector<256x128xf32>
    %cst_21 = arith.constant dense<0.000000e+00> : vector<1x128xf32>
    %26 = tpu.matmul %23, %25, %cst_21 {dimension_numbers = #tpu.dot_dimension_numbers<[1], [0], [0], [1], [0, 0, 1, 1], [], []>} : vector<1x256xf32>, vector<256x128xf32>, vector<1x128xf32> -> vector<1x128xf32>
    %27 = arith.addf %22, %26 : vector<1x128xf32>
    %28 = vector.extract_strided_slice %8 {offsets = [3, 0], sizes = [1, 256], strides = [1, 1]} : vector<8x256xf32> to vector<1x256xf32>
    %c3 = arith.constant 3 : index
    %c0_22 = arith.constant 0 : index
    %c0_23 = arith.constant 0 : index
    %29 = vector.load %arg4[%c3, %c0_22, %c0_23] : memref<8x256x128xf32, #tpu.memory_space<vmem>>, vector<1x256x128xf32>
    %30 = vector.shape_cast %29 : vector<1x256x128xf32> to vector<256x128xf32>
    %cst_24 = arith.constant dense<0.000000e+00> : vector<1x128xf32>
    %31 = tpu.matmul %28, %30, %cst_24 {dimension_numbers = #tpu.dot_dimension_numbers<[1], [0], [0], [1], [0, 0, 1, 1], [], []>} : vector<1x256xf32>, vector<256x128xf32>, vector<1x128xf32> -> vector<1x128xf32>
    %32 = arith.addf %27, %31 : vector<1x128xf32>
    %33 = vector.extract_strided_slice %8 {offsets = [4, 0], sizes = [1, 256], strides = [1, 1]} : vector<8x256xf32> to vector<1x256xf32>
    %c4 = arith.constant 4 : index
    %c0_25 = arith.constant 0 : index
    %c0_26 = arith.constant 0 : index
    %34 = vector.load %arg4[%c4, %c0_25, %c0_26] : memref<8x256x128xf32, #tpu.memory_space<vmem>>, vector<1x256x128xf32>
    %35 = vector.shape_cast %34 : vector<1x256x128xf32> to vector<256x128xf32>
    %cst_27 = arith.constant dense<0.000000e+00> : vector<1x128xf32>
    %36 = tpu.matmul %33, %35, %cst_27 {dimension_numbers = #tpu.dot_dimension_numbers<[1], [0], [0], [1], [0, 0, 1, 1], [], []>} : vector<1x256xf32>, vector<256x128xf32>, vector<1x128xf32> -> vector<1x128xf32>
    %37 = arith.addf %32, %36 : vector<1x128xf32>
    %38 = vector.extract_strided_slice %8 {offsets = [5, 0], sizes = [1, 256], strides = [1, 1]} : vector<8x256xf32> to vector<1x256xf32>
    %c5 = arith.constant 5 : index
    %c0_28 = arith.constant 0 : index
    %c0_29 = arith.constant 0 : index
    %39 = vector.load %arg4[%c5, %c0_28, %c0_29] : memref<8x256x128xf32, #tpu.memory_space<vmem>>, vector<1x256x128xf32>
    %40 = vector.shape_cast %39 : vector<1x256x128xf32> to vector<256x128xf32>
    %cst_30 = arith.constant dense<0.000000e+00> : vector<1x128xf32>
    %41 = tpu.matmul %38, %40, %cst_30 {dimension_numbers = #tpu.dot_dimension_numbers<[1], [0], [0], [1], [0, 0, 1, 1], [], []>} : vector<1x256xf32>, vector<256x128xf32>, vector<1x128xf32> -> vector<1x128xf32>
    %42 = arith.addf %37, %41 : vector<1x128xf32>
    %43 = vector.extract_strided_slice %8 {offsets = [6, 0], sizes = [1, 256], strides = [1, 1]} : vector<8x256xf32> to vector<1x256xf32>
    %c6 = arith.constant 6 : index
    %c0_31 = arith.constant 0 : index
    %c0_32 = arith.constant 0 : index
    %44 = vector.load %arg4[%c6, %c0_31, %c0_32] : memref<8x256x128xf32, #tpu.memory_space<vmem>>, vector<1x256x128xf32>
    %45 = vector.shape_cast %44 : vector<1x256x128xf32> to vector<256x128xf32>
    %cst_33 = arith.constant dense<0.000000e+00> : vector<1x128xf32>
    %46 = tpu.matmul %43, %45, %cst_33 {dimension_numbers = #tpu.dot_dimension_numbers<[1], [0], [0], [1], [0, 0, 1, 1], [], []>} : vector<1x256xf32>, vector<256x128xf32>, vector<1x128xf32> -> vector<1x128xf32>
    %47 = arith.addf %42, %46 : vector<1x128xf32>
    %48 = vector.extract_strided_slice %8 {offsets = [7, 0], sizes = [1, 256], strides = [1, 1]} : vector<8x256xf32> to vector<1x256xf32>
    %c7 = arith.constant 7 : index
    %c0_34 = arith.constant 0 : index
    %c0_35 = arith.constant 0 : index
    %49 = vector.load %arg4[%c7, %c0_34, %c0_35] : memref<8x256x128xf32, #tpu.memory_space<vmem>>, vector<1x256x128xf32>
    %50 = vector.shape_cast %49 : vector<1x256x128xf32> to vector<256x128xf32>
    %cst_36 = arith.constant dense<0.000000e+00> : vector<1x128xf32>
    %51 = tpu.matmul %48, %50, %cst_36 {dimension_numbers = #tpu.dot_dimension_numbers<[1], [0], [0], [1], [0, 0, 1, 1], [], []>} : vector<1x256xf32>, vector<256x128xf32>, vector<1x128xf32> -> vector<1x128xf32>
    %52 = arith.addf %47, %51 : vector<1x128xf32>
    %c0_37 = arith.constant 0 : index
    %c0_38 = arith.constant 0 : index
    %c0_39 = arith.constant 0 : index
    %53 = vector.load %arg7[%c0_37, %c0_38, %c0_39] : memref<1x1x128xf32, #tpu.memory_space<vmem>>, vector<1x1x128xf32>
    %54 = vector.shape_cast %53 : vector<1x1x128xf32> to vector<1x128xf32>
    %55 = vector.shape_cast %52 : vector<1x128xf32> to vector<1x1x128xf32>
    tpu.vector_store %arg7[%c0_37, %c0_38, %c0_39], %55 {strides = array<i32>} : memref<1x1x128xf32, #tpu.memory_space<vmem>>, vector<1x1x128xf32>,
    return
  }
  func.func @transform_0(%arg0: i32) -> (i32, i32, i32) {
    %c0_i32 = arith.constant 0 : i32
    %c0_i32_0 = arith.constant 0 : i32
    %c0_i32_1 = arith.constant 0 : i32
    return %arg0, %c0_i32, %c0_i32_0 : i32, i32, i32
  }
  func.func @transform_1(%arg0: i32) -> (i32, i32) {
    %c0_i32 = arith.constant 0 : i32
    %c0_i32_0 = arith.constant 0 : i32
    %c0_i32_1 = arith.constant 0 : i32
    return %c0_i32, %c0_i32_0 : i32, i32
  }
  func.func @transform_2(%arg0: i32) -> (i32, i32) {
    %c0_i32 = arith.constant 0 : i32
    %c0_i32_0 = arith.constant 0 : i32
    %c0_i32_1 = arith.constant 0 : i32
    return %c0_i32, %c0_i32_0 : i32, i32
  }
  func.func @transform_3(%arg0: i32) -> (i32, i32, i32) {
    %c0_i32 = arith.constant 0 : i32
    %c0_i32_0 = arith.constant 0 : i32
    %c0_i32_1 = arith.constant 0 : i32
    %c0_i32_2 = arith.constant 0 : i32
    return %c0_i32, %c0_i32_0, %c0_i32_1 : i32, i32, i32
  }
  func.func @transform_4(%arg0: i32) -> (i32, i32) {
    %c0_i32 = arith.constant 0 : i32
    %c0_i32_0 = arith.constant 0 : i32
    %c0_i32_1 = arith.constant 0 : i32
    return %c0_i32, %c0_i32_0 : i32, i32
  }
  func.func @transform_5(%arg0: i32) -> (i32, i32, i32) {
    %c0_i32 = arith.constant 0 : i32
    %c0_i32_0 = arith.constant 0 : i32
    %c0_i32_1 = arith.constant 0 : i32
    return %arg0, %c0_i32, %c0_i32_0 : i32, i32, i32
  }
  func.func @transform_6(%arg0: i32) -> (i32, i32, i32) {
    %c0_i32 = arith.constant 0 : i32
    %c0_i32_0 = arith.constant 0 : i32
    %c0_i32_1 = arith.constant 0 : i32
    return %arg0, %c0_i32, %c0_i32_0 : i32, i32, i32
  }
}

</mosaic_0001>

<bundles_post_ra>
// kernel: combine_model_forward.1
= control target key start
LH: loop header
LB: loop body
LE: loop exit
PB: predicated region body
PF: predicated region fallthrough
CT: control target
= control target key end

     0   :  { %12 = vsyncpa [#allocation3], 0  ;;  %s3177_s0 = inlined_call_operand.vmem [shape: f32[2,36,256], index: 0, kind: input, shape index: {}]   ;;  %s3178_s1 = inlined_call_operand.vmem [shape: f32[8,36], index: 1, kind: input, shape index: {}]   ;;  %s3179_s2 = inlined_call_operand.vmem [shape: f32[8,1], index: 2, kind: input, shape index: {}]   ;;  %s3180_s3 = inlined_call_operand.vmem [shape: f32[8,256,128], index: 3, kind: input, shape index: {}]   ;;  %s3181_s4 = inlined_call_operand.vmem [shape: f32[1,128], index: 4, kind: input, shape index: {}]   ;;  %s3182_s5 = inlined_call_operand.vmem [shape: f32[2,8,256], index: 5, kind: output, shape index: {0}]   ;;  %s3183_s6 = inlined_call_operand.hbm [shape: f32[2,1,128], index: 6, kind: output, shape index: {1}]  }
   0x1   :  { %14 = vsyncpa [#allocation3 + $0x1], 0  ;;  %s2256_s21 = smov 0   ;;  %s2258_s22 = smov 0  }
   0x2   :  { %s2260_s23 = smov 0   ;;  %s2262_s24 = smov 0  }
   0x3 LB: > { %s2277_s25 = sadd.s32 4294967295, %s2216_s24   ;;  %s1329_s26 = sadd.s32 4294967294, %s2216_s24   ;;  %s2216_s24 = sphi %s2262_s24, %s3189_s24   ;;  %s2212_s23 = sphi %s2260_s23, %s3188_s23   ;;  %s2208_s22 = sphi %s2258_s22, %s3187_s22   ;;  %s2204_s21 = sphi %s2256_s21, %s3186_s21  }
   0x4   : > { %s2281_s27 = sadd.s32 1, %s2216_s24   ;;  %s163_s28 = sadd.s32 1, %s2212_s23 }
   0x5   : > { %s160_s29 = ssub.s32 %s2216_s24, %s2281_s27  ;;  %p173_p0 = scmp.ne.s32.totalorder %s2212_s23, %s2208_s22 }
   0x6   : > { %p161_p1 = scmp.eq.s32.totalorder %s160_s29, 0  ;;  %p174_p2 = scmp.eq.s32.totalorder %s2277_s25, 1 }
   0x7   : > { %p179_p3 = scmp.ne.s32.totalorder %s2208_s22, %s2204_s21  ;;  %p180_p4 = scmp.eq.s32.totalorder %s1329_s26, 1 }
   0x8   : > { %s2292_s30 = scalar_select %p161_p1, %s2212_s23, %s163_s28  }
   0x9   : > { %p2294_p5 = por %p174_p2, %p173_p0  ;;  %p2298_p6 = por %p180_p4, %p179_p3 }
   0xa   : > { %p1332_p7 = scmp.ge.s32.totalorder %s2216_s24, 1  ;;  %p218_p8 = scmp.lt.s32.totalorder %s2216_s24, 3 }
   0xc   : > { %p219_p9 = pnand %p1332_p7, %p218_p8 }
   0xd   : > { %p252_p10 = scmp.lt.s32.totalorder (!%p219_p9), %s2277_s25, 1  ;;  %v2218_v0 = vmov (!%p219_p9), 0.0   ;;  %v2219_v1 = vmov (!%p219_p9), 0   ;;  %v273_v2 = vld [vmem:[%s3179_s2] sm:$0xff] (!%p219_p9)  ;;  %v383_v4 = vld [vmem:[%s3180_s3 + $0x88] sm:$0xff] (!%p219_p9)  ;;  %v384_v9 = vld [vmem:[%s3180_s3 + $0x90] sm:$0xff] (!%p219_p9) }
   0xe   : > { %222 = sbr.rel (%p219_p9) target bundleno = 586 (0x24a), region = 40  ;;  %354 = vmatprep.mubr.f32.mxu0 (!%p219_p9), %v2218_v0  ;;  %2153 = vset.pattern.permute.xlu0 (!%p219_p9), %v2219_v1  ;;  %v382_v3 = vld [vmem:[%s3180_s3 + $0x80] sm:$0xff] (!%p219_p9)  ;;  %v367_v7 = vld [vmem:[%s3180_s3 + $0x8] sm:$0xff] (!%p219_p9)  ;;  %v385_v10 = vld [vmem:[%s3180_s3 + $0x98] sm:$0xff] (!%p219_p9)  ;;  %vm283_vm0 = vcmask (!%p219_p9), 1043456   ;;  %vm279_vm1 = vcmask (!%p219_p9), 293888  }
   0xf   : > { %276 = vperm.xlu0 (!%p219_p9), %2153, %v273_v2   ;;  %v1855_v5 = vpack.c.bf16 (!%p219_p9), %v383_v4, %v382_v3  ;;  %v366_v6 = vld [vmem:[%s3180_s3] sm:$0xff] (!%p219_p9)  ;;  %v368_v11 = vld [vmem:[%s3180_s3 + $0x10] sm:$0xff] (!%p219_p9)  ;;  %v1859_v12 = vpack.c.bf16 (!%p219_p9), %v385_v10, %v384_v9  ;;  %v369_v13 = vld [vmem:[%s3180_s3 + $0x18] sm:$0xff] (!%p219_p9)  ;;  %s250_s9 = sand.u32 (!%p219_p9), 1, %s2208_s22   ;;  %s1563_s10 = sshll.u32 (!%p219_p9), %s2277_s25, 4 }
  0x10   : > { %v1857_v8 = vpack.c.bf16 (!%p219_p9), %v367_v7, %v366_v6  ;;  %v1861_v14 = vpack.c.bf16 (!%p219_p9), %v369_v13, %v368_v11  ;;  %v386_v15 = vld [vmem:[%s3180_s3 + $0xa0] sm:$0xff] (!%p219_p9)  ;;  %v387_v27 = vld [vmem:[%s3180_s3 + $0xa8] sm:$0xff] (!%p219_p9)  ;;  %v388_v36 = vld [vmem:[%s3180_s3 + $0xb0] sm:$0xff] (!%p219_p9)  ;;  %s1234_s14 = scalar_lea.sflag (!%p219_p9), [#allocation3], %s250_s9 }
  0x11   : > { %1856 = vmatprep.subr.bf16.mxu1 (!%p219_p9), %v1855_v5  ;;  %v370_v28 = vld [vmem:[%s3180_s3 + $0x20] sm:$0xff] (!%p219_p9)  ;;  %v1863_v31 = vpack.c.bf16 (!%p219_p9), %v387_v27, %v386_v15  ;;  %v371_v32 = vld [vmem:[%s3180_s3 + $0x28] sm:$0xff] (!%p219_p9)  ;;  %v389_v37 = vld [vmem:[%s3180_s3 + $0xb8] sm:$0xff] (!%p219_p9) }
  0x12   : > { %1858 = vmatpush3.bf16.msra.mxu1 (!%p219_p9), %v1857_v8  ;;  %v1355_v30 = vld [vmem:[%s3180_s3 + $0x180] sm:$0xff] (!%p219_p9)  ;;  %v1356_v34 = vld [vmem:[%s3180_s3 + $0x188] sm:$0xff] (!%p219_p9)  ;;  %v1865_v35 = vpack.c.bf16 (!%p219_p9), %v371_v32, %v370_v28  ;;  %v372_v38 = vld [vmem:[%s3180_s3 + $0x30] sm:$0xff] (!%p219_p9)  ;;  %v1867_v43 = vpack.c.bf16 (!%p219_p9), %v389_v37, %v388_v36 }
  0x13   : > { %1860 = vmatprep.subr.bf16.mxu1 (!%p219_p9), %v1859_v12  ;;  %v373_v39 = vld [vmem:[%s3180_s3 + $0x38] sm:$0xff] (!%p219_p9)  ;;  %v1339_v40 = vld [vmem:[%s3180_s3 + $0x100] sm:$0xff] (!%p219_p9)  ;;  %v1340_v41 = vld [vmem:[%s3180_s3 + $0x108] sm:$0xff] (!%p219_p9)  ;;  %v1887_v49 = vpack.c.bf16 (!%p219_p9), %v1356_v34, %v1355_v30 }
  0x14   : > { %v1357_v42 = vld [vmem:[%s3180_s3 + $0x190] sm:$0xff] (!%p219_p9)  ;;  %v1869_v44 = vpack.c.bf16 (!%p219_p9), %v373_v39, %v372_v38  ;;  %v1358_v45 = vld [vmem:[%s3180_s3 + $0x198] sm:$0xff] (!%p219_p9)  ;;  %v390_v46 = vld [vmem:[%s3180_s3 + $0xc0] sm:$0xff] (!%p219_p9)  ;;  %v1889_v54 = vpack.c.bf16 (!%p219_p9), %v1340_v41, %v1339_v40 }
  0x15   : > { %s2315_s15 = scalar_select %p252_p10, %s2277_s25, 1  ;;  %v391_v47 = vld [vmem:[%s3180_s3 + $0xc8] sm:$0xff]  ;;  %v374_v51 = vld [vmem:[%s3180_s3 + $0x40] sm:$0xff]  ;;  %v1341_v55 = vld [vmem:[%s3180_s3 + $0x110] sm:$0xff]  ;;  %v1891_v57 = vpack.c.bf16 %v1358_v45, %v1357_v42 }
  0x16   : > { %1862 = vmatpush3.bf16.msra.mxu1 %v1861_v14  ;;  %v1871_v50 = vpack.c.bf16 %v391_v47, %v390_v46  ;;  %v375_v52 = vld [vmem:[%s3180_s3 + $0x48] sm:$0xff]  ;;  %v272_v53 = vld [vmem:[%s3178_s1] sm:$0xff]  ;;  %v1342_v56 = vld [vmem:[%s3180_s3 + $0x118] sm:$0xff]  ;;  %s2220_s25 = smov [#allocation2]  }
  0x17   : > { %s2111_s20 = smul.u32 80, %s2315_s15  ;;  %1864 = vmatprep.subr.bf16.mxu1 %v1863_v31  ;;  %v1359_v58 = vld [vmem:[%s3180_s3 + $0x1a0] sm:$0xff]  ;;  %v1873_v59 = vpack.c.bf16 %v375_v52, %v374_v51  ;;  %v392_v60 = vld [vmem:[%s3180_s3 + $0xd0] sm:$0xff]  ;;  %v393_v61 = vld [vmem:[%s3180_s3 + $0xd8] sm:$0xff]  ;;  %v1893_v3 = vpack.c.bf16 %v1342_v56, %v1341_v55  ;;  %s1566_s16 = sshll.u32 %s2315_s15, 4 }
  0x18   : > { %v1360_v62 = vld [vmem:[%s3180_s3 + $0x1a8] sm:$0xff]  ;;  %v1875_v63 = vpack.c.bf16 %v393_v61, %v392_v60  ;;  %v376_v0 = vld [vmem:[%s3180_s3 + $0x50] sm:$0xff]  ;;  %v377_v1 = vld [vmem:[%s3180_s3 + $0x58] sm:$0xff]  ;;  %s261_s29 = scalar_lea.vmem %s3182_s5, %s1566_s16  ;;  %s251_s15 = scalar_lea.vmem [#allocation2], %s250_s9 }
  0x19   : > { %s2339_s17 = scalar_lea.vmem %s3177_s0, %s2111_s20  ;;  %v394_v2 = vld [vmem:[%s3180_s3 + $0xe0] sm:$0xff]  ;;  %v395_v4 = vld [vmem:[%s3180_s3 + $0xe8] sm:$0xff]  ;;  %v1895_v5 = vpack.c.bf16 %v1360_v62, %v1359_v58  ;;  %v1361_v8 = vld [vmem:[%s3180_s3 + $0x1b0] sm:$0xff]  ;;  %v1877_v9 = vpack.c.bf16 %v377_v1, %v376_v0  ;;  %s1249_s11 = sshll.u32 %s251_s15, 4  ;;  %s3137_s11 = int_to_ptr.vmem [resolvable:$true] %s1249_s11 }
  0x1a   : > { %v263_v16 = vld [vmem:[%s2339_s17 + $0x8] sm:$0xff]  ;;  %v265_v17 = vld [vmem:[%s2339_s17 + $0x18] sm:$0xff]  ;;  %v262_v18 = vld [vmem:[%s2339_s17] sm:$0xff]  ;;  %1866 = vmatpush3.bf16.msra.mxu1 %v1865_v35  ;;  %v1879_v11 = vpack.c.bf16 %v395_v4, %v394_v2  ;;  %s2154_s18 = scalar_lea.vmem %s3137_s11, 16  ;;  %s2158_s16 = sshll.u32 %s2220_s25, 4  ;;  %s2159_s16 = int_to_ptr.vmem [resolvable:$false] %s2158_s16 }
  0x1b   : > { %v1847_v19 = vpack.c.bf16 %v265_v17, %v263_v16  ;;  %v264_v20 = vld [vmem:[%s2339_s17 + $0x10] sm:$0xff]  ;;  %v267_v21 = vld [vmem:[%s2339_s17 + $0x28] sm:$0xff]  ;;  %v269_v22 = vld [vmem:[%s2339_s17 + $0x38] sm:$0xff]  ;;  %1868 = vmatprep.subr.bf16.mxu1 %v1867_v43  ;;  %p2155_p11 = scmp.ne.s32.totalorder %s3137_s11, %s2154_s18  ;;  %p2161_p0 = scmp.lt.s32.totalorder %s3137_s11, %s2159_s16 }
  0x1c   : > { %v1849_v23 = vpack.c.bf16 %v264_v20, %v262_v18  ;;  %v1851_v24 = vpack.c.bf16 %v269_v22, %v267_v21  ;;  %v266_v25 = vld [vmem:[%s2339_s17 + $0x20] sm:$0xff]  ;;  %v268_v26 = vld [vmem:[%s2339_s17 + $0x30] sm:$0xff]  ;;  %v271_v33 = vld [vmem:[%s2339_s17 + $0x48] sm:$0xf] }
  0x1d   : > { %1848 = vmatprep.subr.bf16.mxu0 %v1847_v19  ;;  %v1853_v29 = vpack.c.bf16 %v268_v26, %v266_v25  ;;  %v270_v48 = vld [vmem:[%s2339_s17 + $0x40] sm:$0xf]  ;;  %v1344_v7 = vld [vmem:[%s3180_s3 + $0x128] sm:$0xff]  ;;  %v1362_v10 = vld [vmem:[%s3180_s3 + $0x1b8] sm:$0xff]  ;;  %p2156_p12 = pnand %p2155_p11, %p2294_p5  ;;  %s2160_s17 = scalar_lea.vmem %s2159_s16, 32 }
  0x1e   : > { %1850 = vmatpush1.bf16.msra.mxu0 %v1849_v23  ;;  %1870 = vmatpush3.bf16.msra.mxu1 %v1869_v44  ;;  %v1343_v6 = vld [vmem:[%s3180_s3 + $0x120] sm:$0xff]  ;;  %v379_v13 = vld [vmem:[%s3180_s3 + $0x68] sm:$0xff]  ;;  %v1899_v15 = vpack.c.bf16 %v1362_v10, %v1361_v8  ;;  %v1345_v16 = vld [vmem:[%s3180_s3 + $0x130] sm:$0xff]  ;;  %p2162_p1 = scmp.lt.s32.totalorder %s2160_s17, %s2154_s18 }
  0x1f   : > { %1852 = vmatprep.subr.bf16.mxu0 %v1851_v24  ;;  %1872 = vmatprep.subr.bf16.mxu1 %v1871_v50  ;;  %v378_v12 = vld [vmem:[%s3180_s3 + $0x60] sm:$0xff]  ;;  %v1897_v14 = vpack.c.bf16 %v1344_v7, %v1343_v6  ;;  %v1346_v17 = vld [vmem:[%s3180_s3 + $0x138] sm:$0xff]  ;;  %v1364_v20 = vld [vmem:[%s3180_s3 + $0x1c8] sm:$0xff]  ;;  %p2157_p13 = pneg %p2156_p12 }
  0x20   : > { %v1881_v18 = vpack.c.bf16 %v379_v13, %v378_v12  ;;  %v1363_v19 = vld [vmem:[%s3180_s3 + $0x1c0] sm:$0xff]  ;;  %v1901_v21 = vpack.c.bf16 %v1346_v17, %v1345_v16  ;;  %v1348_v24 = vld [vmem:[%s3180_s3 + $0x148] sm:$0xff]  ;;  %v1365_v25 = vld [vmem:[%s3180_s3 + $0x1d0] sm:$0xff]  ;;  %p2163_p2 = por %p2162_p1, %p2161_p0 }
  0x21   : > { %v1903_v22 = vpack.c.bf16 %v1364_v20, %v1363_v19  ;;  %v1347_v23 = vld [vmem:[%s3180_s3 + $0x140] sm:$0xff]  ;;  %v1366_v26 = vld [vmem:[%s3180_s3 + $0x1d8] sm:$0xff]  ;;  %v1352_v36 = vld [vmem:[%s3180_s3 + $0x168] sm:$0xff] }
  0x22   : > { %1854 = vmatpush1.bf16.msra.mxu0 %v1853_v29  ;;  %1874 = vmatpush3.bf16.msra.mxu1 %v1873_v59  ;;  %v1905_v27 = vpack.c.bf16 %v1348_v24, %v1347_v23  ;;  %v1907_v28 = vpack.c.bf16 %v1366_v26, %v1365_v25  ;;  %v1349_v29 = vld [vmem:[%s3180_s3 + $0x150] sm:$0xff]  ;;  %v1350_v30 = vld [vmem:[%s3180_s3 + $0x158] sm:$0xff]  ;;  %v1367_v32 = vld [vmem:[%s3180_s3 + $0x1e0] sm:$0xff]  ;;  %p2164_p3 = pnand %p2163_p2, %p2157_p13 }
  0x23   : > { %1336 = vmatprep.subr.msk.mxu0 %vm283_vm0, %v271_v33  ;;  %1876 = vmatprep.subr.bf16.mxu1 %v1875_v63  ;;  %v1909_v31 = vpack.c.bf16 %v1350_v30, %v1349_v29  ;;  %v1368_v33 = vld [vmem:[%s3180_s3 + $0x1e8] sm:$0xff]  ;;  %v1351_v35 = vld [vmem:[%s3180_s3 + $0x160] sm:$0xff]  ;;  %v396_v38 = vld [vmem:[%s3180_s3 + $0xf0] sm:$0xff] }
  0x24   : > { %v1911_v34 = vpack.c.bf16 %v1368_v33, %v1367_v32  ;;  %v1913_v37 = vpack.c.bf16 %v1352_v36, %v1351_v35  ;;  %v397_v39 = vld [vmem:[%s3180_s3 + $0xf8] sm:$0xff]  ;;  %v380_v41 = vld [vmem:[%s3180_s3 + $0x70] sm:$0xff]  ;;  %v1387_v50 = vld [vmem:[%s3180_s3 + $0x280] sm:$0xff] }
  0x25   : > { %v1883_v40 = vpack.c.bf16 %v397_v39, %v396_v38  ;;  %v381_v42 = vld [vmem:[%s3180_s3 + $0x78] sm:$0xff]  ;;  %v1369_v44 = vld [vmem:[%s3180_s3 + $0x1f0] sm:$0xff]  ;;  %v1388_v51 = vld [vmem:[%s3180_s3 + $0x288] sm:$0xff] }
  0x26   : > { %1337 = vmatpush1.msk.msra.mxu0 %vm283_vm0, %v270_v48  ;;  %1878 = vmatpush3.bf16.msra.mxu1 %v1877_v9  ;;  %v1885_v43 = vpack.c.bf16 %v381_v42, %v380_v41  ;;  %v1370_v45 = vld [vmem:[%s3180_s3 + $0x1f8] sm:$0xff]  ;;  %v1353_v47 = vld [vmem:[%s3180_s3 + $0x170] sm:$0xff]  ;;  %v1919_v52 = vpack.c.bf16 %v1388_v51, %v1387_v50  ;;  %v1371_v60 = vld [vmem:[%s3180_s3 + $0x200] sm:$0xff] }
  0x27   : > { %1338 = vmatmul.mubr.msk.f32.vlgmr.msra.gmra.mrb[0].mxu0 %vm279_vm1, %v272_v53  ;;  %1888 = vmatprep.subr.bf16.mxu0 %v1887_v49  ;;  %v1915_v46 = vpack.c.bf16 %v1370_v45, %v1369_v44  ;;  %v1354_v48 = vld [vmem:[%s3180_s3 + $0x178] sm:$0xff]  ;;  %v1419_v53 = vld [vmem:[%s3180_s3 + $0x380] sm:$0xff]  ;;  %v1372_v61 = vld [vmem:[%s3180_s3 + $0x208] sm:$0xff] }
  0x28   : > { %1890 = vmatpush3.bf16.msra.mxu0 %v1889_v54  ;;  %1880 = vmatprep.subr.bf16.mxu1 %v1879_v11  ;;  %v1917_v49 = vpack.c.bf16 %v1354_v48, %v1353_v47  ;;  %v1420_v54 = vld [vmem:[%s3180_s3 + $0x388] sm:$0xff]  ;;  %v1403_v63 = vld [vmem:[%s3180_s3 + $0x300] sm:$0xff]  ;;  %v1389_v2 = vld [vmem:[%s3180_s3 + $0x290] sm:$0xff] }
  0x29   : > { %1892 = vmatprep.subr.bf16.mxu0 %v1891_v57  ;;  %v1951_v55 = vpack.c.bf16 %v1420_v54, %v1419_v53  ;;  %v1404_v1 = vld [vmem:[%s3180_s3 + $0x308] sm:$0xff]  ;;  %v1421_v6 = vld [vmem:[%s3180_s3 + $0x390] sm:$0xff]  ;;  %v1422_v7 = vld [vmem:[%s3180_s3 + $0x398] sm:$0xff] }
  0x2a   : > { %1882 = vmatpush3.bf16.msra.mxu1 %v1881_v18  ;;  %v1373_v8 = vld [vmem:[%s3180_s3 + $0x210] sm:$0xff]  ;;  %v1374_v9 = vld [vmem:[%s3180_s3 + $0x218] sm:$0xff]  ;;  %v1953_v12 = vpack.c.bf16 %v1404_v1, %v1403_v63  ;;  %v1955_v17 = vpack.c.bf16 %v1422_v7, %v1421_v6  ;;  %v1375_v25 = vld [vmem:[%s3180_s3 + $0x220] sm:$0xff] }
  0x2b   : > { %1884 = vmatprep.subr.bf16.mxu1 %v1883_v40  ;;  %v1405_v18 = vld [vmem:[%s3180_s3 + $0x310] sm:$0xff]  ;;  %v1406_v19 = vld [vmem:[%s3180_s3 + $0x318] sm:$0xff]  ;;  %v1925_v20 = vpack.c.bf16 %v1374_v9, %v1373_v8  ;;  %v1376_v26 = vld [vmem:[%s3180_s3 + $0x228] sm:$0xff] }
  0x2c   : > { %1894 = vmatpush3.bf16.msra.mxu0 %v1893_v3  ;;  %v1390_v3 = vld [vmem:[%s3180_s3 + $0x298] sm:$0xff]  ;;  %v1408_v32 = vld [vmem:[%s3180_s3 + $0x328] sm:$0xff]  ;;  %v1929_v33 = vpack.c.bf16 %v1376_v26, %v1375_v25  ;;  %v1395_v40 = vld [vmem:[%s3180_s3 + $0x2c0] sm:$0xff] }
  0x2d   : > { %1896 = vmatprep.subr.bf16.mxu0 %v1895_v5  ;;  %v1921_v5 = vpack.c.bf16 %v1372_v61, %v1371_v60  ;;  %v1923_v13 = vpack.c.bf16 %v1390_v3, %v1389_v2  ;;  %v1394_v29 = vld [vmem:[%s3180_s3 + $0x2b8] sm:$0xff]  ;;  %v1396_v41 = vld [vmem:[%s3180_s3 + $0x2c8] sm:$0xff]  ;;  %v1381_v61 = vld [vmem:[%s3180_s3 + $0x250] sm:$0xff] }
  0x2e   : > { %1886 = vmatpush3.bf16.msra.mxu1 %v1885_v43  ;;  %v1426_v35 = vld [vmem:[%s3180_s3 + $0x3b8] sm:$0xff]  ;;  %v1409_v43 = vld [vmem:[%s3180_s3 + $0x330] sm:$0xff]  ;;  %v1428_v47 = vld [vmem:[%s3180_s3 + $0x3c8] sm:$0xff]  ;;  %v1935_v48 = vpack.c.bf16 %v1396_v41, %v1395_v40 }
  0x2f   : > { %1920 = vmatprep.subr.bf16.mxu1 %v1919_v52  ;;  %v1378_v38 = vld [vmem:[%s3180_s3 + $0x238] sm:$0xff]  ;;  %v1380_v50 = vld [vmem:[%s3180_s3 + $0x248] sm:$0xff]  ;;  %v1397_v52 = vld [vmem:[%s3180_s3 + $0x2d0] sm:$0xff] }
  0x30   : > { %1898 = vmatpush3.bf16.msra.mxu0 %v1897_v14  ;;  %v1391_v14 = vld [vmem:[%s3180_s3 + $0x2a0] sm:$0xff]  ;;  %v1410_v44 = vld [vmem:[%s3180_s3 + $0x338] sm:$0xff]  ;;  %v1400_v2 = vld [vmem:[%s3180_s3 + $0x2e8] sm:$0xff] }
  0x31   : > { %1900 = vmatprep.subr.bf16.mxu0 %v1899_v15  ;;  %v1392_v15 = vld [vmem:[%s3180_s3 + $0x2a8] sm:$0xff]  ;;  %v1965_v51 = vpack.c.bf16 %v1410_v44, %v1409_v43  ;;  %v1398_v53 = vld [vmem:[%s3180_s3 + $0x2d8] sm:$0xff]  ;;  %v1399_v1 = vld [vmem:[%s3180_s3 + $0x2e0] sm:$0xff] }
  0x32   : > { %v1927_v24 = vpack.c.bf16 %v1392_v15, %v1391_v14  ;;  %v1939_v60 = vpack.c.bf16 %v1398_v53, %v1397_v52  ;;  %v1414_v6 = vld [vmem:[%s3180_s3 + $0x358] sm:$0xff]  ;;  %v1431_v8 = vld [vmem:[%s3180_s3 + $0x3e0] sm:$0xff]  ;;  %v1432_v9 = vld [vmem:[%s3180_s3 + $0x3e8] sm:$0xff] }
  0x33   : > { %v1401_v14 = vld [vmem:[%s3180_s3 + $0x2f0] sm:$0xff]  ;;  %v1402_v15 = vld [vmem:[%s3180_s3 + $0x2f8] sm:$0xff]  ;;  %v1451_v26 = vld [vmem:[%s3180_s3 + $0x480] sm:$0xff] }
  0x34   : > { %1902 = vmatpush3.bf16.msra.mxu0 %v1901_v21  ;;  %v1423_v21 = vld [vmem:[%s3180_s3 + $0x3a0] sm:$0xff]  ;;  %v1485_v44 = vld [vmem:[%s3180_s3 + $0x590] sm:$0xff]  ;;  %v1456_v53 = vld [vmem:[%s3180_s3 + $0x4a8] sm:$0xff] }
  0x35   : > { %1904 = vmatprep.subr.bf16.mxu0 %v1903_v22  ;;  %v1424_v22 = vld [vmem:[%s3180_s3 + $0x3a8] sm:$0xff]  ;;  %v1467_v41 = vld [vmem:[%s3180_s3 + $0x500] sm:$0xff] }
  0x36   : > { %v1959_v30 = vpack.c.bf16 %v1424_v22, %v1423_v21  ;;  %v1434_v21 = vld [vmem:[%s3180_s3 + $0x3f8] sm:$0xff]  ;;  %v1947_v22 = vpack.c.bf16 %v1402_v15, %v1401_v14  ;;  %v1455_v52 = vld [vmem:[%s3180_s3 + $0x4a0] sm:$0xff] }
  0x37   : > { %v1442_v14 = vld [vmem:[%s3180_s3 + $0x438] sm:$0xff] }
  0x38   : > { %1906 = vmatpush3.bf16.msra.mxu0 %v1905_v27  ;;  %v1957_v27 = vpack.c.bf16 %v1406_v19, %v1405_v18  ;;  %v1416_v18 = vld [vmem:[%s3180_s3 + $0x368] sm:$0xff] }
  0x39   : > { %1908 = vmatprep.subr.bf16.mxu0 %v1907_v28  ;;  %v1393_v28 = vld [vmem:[%s3180_s3 + $0x2b0] sm:$0xff] }
  0x3a   : > { %v1931_v36 = vpack.c.bf16 %v1394_v29, %v1393_v28  ;;  %v1417_v29 = vld [vmem:[%s3180_s3 + $0x370] sm:$0xff] }
  0x3c   : > { %1910 = vmatpush3.bf16.msra.mxu0 %v1909_v31  ;;  %v1407_v31 = vld [vmem:[%s3180_s3 + $0x320] sm:$0xff] }
  0x3d   : > { %1912 = vmatprep.subr.bf16.mxu0 %v1911_v34  ;;  %v1425_v34 = vld [vmem:[%s3180_s3 + $0x3b0] sm:$0xff]  ;;  %v1961_v39 = vpack.c.bf16 %v1408_v32, %v1407_v31  ;;  %v1483_v32 = vld [vmem:[%s3180_s3 + $0x580] sm:$0xff] }
  0x3e   : > { %v1963_v42 = vpack.c.bf16 %v1426_v35, %v1425_v34  ;;  %v1435_v35 = vld [vmem:[%s3180_s3 + $0x400] sm:$0xff] }
  0x40   : > { %1914 = vmatpush3.bf16.msra.mxu0 %v1913_v37  ;;  %v1377_v37 = vld [vmem:[%s3180_s3 + $0x230] sm:$0xff] }
  0x41   : > { %1916 = vmatprep.subr.bf16.mxu0 %v1915_v46  ;;  %v1933_v45 = vpack.c.bf16 %v1378_v38, %v1377_v37  ;;  %v1427_v46 = vld [vmem:[%s3180_s3 + $0x3c0] sm:$0xff]  ;;  %v1453_v38 = vld [vmem:[%s3180_s3 + $0x490] sm:$0xff] }
  0x42   : > { %v1967_v54 = vpack.c.bf16 %v1428_v47, %v1427_v46 }
  0x44   : > { %1918 = vmatpush3.bf16.msra.mxu0 %v1917_v49  ;;  %v1379_v49 = vld [vmem:[%s3180_s3 + $0x240] sm:$0xff] }
  0x45   : > { %1952 = vmatprep.subr.bf16.mxu0 %v1951_v55  ;;  %v1411_v55 = vld [vmem:[%s3180_s3 + $0x340] sm:$0xff] }
  0x8e   : > { %v277_v56 = vpop.permute.xlu0 %276 }
  0xfa   : > { %v356_v57 = vpop.f32.mrb[0].mxu0 }
  0xfb   : > { %v357_v58 = vadd.f32 %v356_v57, %v277_v56  ;;  %v358_v59 = vpop.f32.mrb[1].mxu0  ;;  %v1937_v57 = vpack.c.bf16 %v1380_v50, %v1379_v49  ;;  %v1438_v49 = vld [vmem:[%s3180_s3 + $0x418] sm:$0xff] }
  0xfc   : > { %v359_v62 = vadd.f32 %v358_v59, %v277_v56  ;;  %v1412_v56 = vld [vmem:[%s3180_s3 + $0x348] sm:$0xff]  ;;  %v1430_v59 = vld [vmem:[%s3180_s3 + $0x3d8] sm:$0xff] }
  0xfd   : > { %v2550_v0 = vmax.f32 %v357_v58, 0.0  ;;  %v1429_v58 = vld [vmem:[%s3180_s3 + $0x3d0] sm:$0xff]  ;;  %v1969_v63 = vpack.c.bf16 %v1412_v56, %v1411_v55 }
  0xfe   : > { %v2561_v4 = vmax.f32 %v359_v62, 0.0  ;;  %v1382_v62 = vld [vmem:[%s3180_s3 + $0x258] sm:$0xff]  ;;  %v1971_v3 = vpack.c.bf16 %v1430_v59, %v1429_v58  ;;  %v1469_v56 = vld [vmem:[%s3180_s3 + $0x510] sm:$0xff] }
  0xff   : > { %363 = vst [vmem:[%s261_s29] sm:$0xff] %v2550_v0  ;;  %v504_v16 = vrot.slane %v2550_v0, 1  ;;  %v1941_v7 = vpack.c.bf16 %v1382_v62, %v1381_v61  ;;  %v612_v46 = vrot.slane %v2550_v0, 2  ;;  %v1488_v61 = vld [vmem:[%s3180_s3 + $0x5a8] sm:$0xff]  ;;  %v1991_v62 = vpack.c.bf16 %v1456_v53, %v1455_v52  ;;  %v1465_v52 = vld [vmem:[%s3180_s3 + $0x4f0] sm:$0xff]  ;;  %v1466_v53 = vld [vmem:[%s3180_s3 + $0x4f8] sm:$0xff] }
 0x100   : > { %364 = vst [vmem:[%s261_s29 + $0x8] sm:$0xff] %v2561_v4  ;;  %462 = vmatprep.mubr.f32.mxu1 %v2561_v4  ;;  %v505_v10 = vrot.slane %v2561_v4, 1  ;;  %v613_v11 = vrot.slane %v2561_v4, 2  ;;  %v721_v23 = vrot.slane %v2561_v4, 3  ;;  %v829_v50 = vrot.slane %v2561_v4, 4  ;;  %s3135_s29 = scalar_lea.hbm %s3183_s6, %s1563_s10 }
 0x101   : > { %463 = vmatmul.mubr.f32.vlgmr.msra.gmra.mrb[0].mxu1 %v2550_v0  ;;  %v937_v58 = vrot.slane %v2561_v4, 5 }
 0x102   : > { %1922 = vmatpush3.bf16.msra.mxu1 %v1921_v5  ;;  %572 = vmatprep.mubr.f32.mxu0 %v505_v10  ;;  %v1413_v5 = vld [vmem:[%s3180_s3 + $0x350] sm:$0xff]  ;;  %v1943_v10 = vpack.c.bf16 %v1400_v2, %v1399_v1  ;;  %v1440_v1 = vld [vmem:[%s3180_s3 + $0x428] sm:$0xff] }
 0x103   : > { %680 = vmatprep.mubr.f32.mxu1 %v613_v11  ;;  %573 = vmatmul.mubr.f32.vlgmr.msra.gmra.mrb[2].mxu0 %v504_v16  ;;  %v1383_v11 = vld [vmem:[%s3180_s3 + $0x260] sm:$0xff]  ;;  %v1975_v16 = vpack.c.bf16 %v1432_v9, %v1431_v8  ;;  %v1472_v8 = vld [vmem:[%s3180_s3 + $0x528] sm:$0xff] }
 0x104   : > { %1954 = vmatpush3.bf16.msra.mxu0 %v1953_v12  ;;  %1924 = vmatprep.subr.bf16.mxu1 %v1923_v13  ;;  %v1384_v12 = vld [vmem:[%s3180_s3 + $0x268] sm:$0xff]  ;;  %v1973_v13 = vpack.c.bf16 %v1414_v6, %v1413_v5  ;;  %v1458_v5 = vld [vmem:[%s3180_s3 + $0x4b8] sm:$0xff] }
 0x105   : > { %788 = vmatprep.mubr.f32.mxu0 %v721_v23  ;;  %1956 = vmatprep.subr.bf16.mxu0 %v1955_v17  ;;  %v1415_v17 = vld [vmem:[%s3180_s3 + $0x360] sm:$0xff]  ;;  %v1945_v19 = vpack.c.bf16 %v1384_v12, %v1383_v11  ;;  %v1385_v23 = vld [vmem:[%s3180_s3 + $0x270] sm:$0xff]  ;;  %v1490_v11 = vld [vmem:[%s3180_s3 + $0x5b8] sm:$0xff] }
 0x106   : > { %1926 = vmatpush3.bf16.msra.mxu1 %v1925_v20  ;;  %v1433_v20 = vld [vmem:[%s3180_s3 + $0x3f0] sm:$0xff]  ;;  %v1977_v25 = vpack.c.bf16 %v1416_v18, %v1415_v17  ;;  %v1460_v17 = vld [vmem:[%s3180_s3 + $0x4c8] sm:$0xff] }
 0x107   : > { %1928 = vmatprep.subr.bf16.mxu1 %v1927_v24  ;;  %v1386_v24 = vld [vmem:[%s3180_s3 + $0x278] sm:$0xff]  ;;  %v1979_v28 = vpack.c.bf16 %v1434_v21, %v1433_v20 }
 0x108   : > { %1958 = vmatpush3.bf16.msra.mxu0 %v1957_v27  ;;  %v1452_v27 = vld [vmem:[%s3180_s3 + $0x488] sm:$0xff]  ;;  %v1949_v31 = vpack.c.bf16 %v1386_v24, %v1385_v23  ;;  %v1474_v20 = vld [vmem:[%s3180_s3 + $0x538] sm:$0xff] }
 0x109   : > { %1960 = vmatprep.subr.bf16.mxu0 %v1959_v30  ;;  %v1418_v30 = vld [vmem:[%s3180_s3 + $0x378] sm:$0xff]  ;;  %v1983_v34 = vpack.c.bf16 %v1452_v27, %v1451_v26  ;;  %v1492_v23 = vld [vmem:[%s3180_s3 + $0x5c8] sm:$0xff] }
 0x10a   : > { %1930 = vmatpush3.bf16.msra.mxu1 %v1929_v33  ;;  %v1484_v33 = vld [vmem:[%s3180_s3 + $0x588] sm:$0xff]  ;;  %v1981_v37 = vpack.c.bf16 %v1418_v30, %v1417_v29  ;;  %v1462_v29 = vld [vmem:[%s3180_s3 + $0x4d8] sm:$0xff] }
 0x10b   : > { %1932 = vmatprep.subr.bf16.mxu1 %v1931_v36  ;;  %v1436_v36 = vld [vmem:[%s3180_s3 + $0x408] sm:$0xff]  ;;  %v2015_v40 = vpack.c.bf16 %v1484_v33, %v1483_v32 }
 0x10c   : > { %1962 = vmatpush3.bf16.msra.mxu0 %v1961_v39  ;;  %v1454_v39 = vld [vmem:[%s3180_s3 + $0x498] sm:$0xff]  ;;  %v1985_v43 = vpack.c.bf16 %v1436_v36, %v1435_v35  ;;  %v1444_v26 = vld [vmem:[%s3180_s3 + $0x448] sm:$0xff] }
 0x10d   : > { %1964 = vmatprep.subr.bf16.mxu0 %v1963_v42  ;;  %v1468_v42 = vld [vmem:[%s3180_s3 + $0x508] sm:$0xff]  ;;  %v1987_v47 = vpack.c.bf16 %v1454_v39, %v1453_v38  ;;  %v1494_v35 = vld [vmem:[%s3180_s3 + $0x5d8] sm:$0xff] }
 0x10e   : > { %1934 = vmatpush3.bf16.msra.mxu1 %v1933_v45  ;;  %v1486_v45 = vld [vmem:[%s3180_s3 + $0x598] sm:$0xff]  ;;  %v1476_v32 = vld [vmem:[%s3180_s3 + $0x548] sm:$0xff] }
 0x10f   : > { %1936 = vmatprep.subr.bf16.mxu1 %v1935_v48  ;;  %v1437_v48 = vld [vmem:[%s3180_s3 + $0x410] sm:$0xff]  ;;  %v2019_v55 = vpack.c.bf16 %v1486_v45, %v1485_v44  ;;  %v1446_v38 = vld [vmem:[%s3180_s3 + $0x458] sm:$0xff] }
 0x110   : > { %1966 = vmatpush3.bf16.msra.mxu0 %v1965_v51  ;;  %v2017_v51 = vpack.c.bf16 %v1468_v42, %v1467_v41  ;;  %v1989_v59 = vpack.c.bf16 %v1438_v49, %v1437_v48  ;;  %v1464_v41 = vld [vmem:[%s3180_s3 + $0x4e8] sm:$0xff]  ;;  %v1478_v44 = vld [vmem:[%s3180_s3 + $0x558] sm:$0xff]  ;;  %v1447_v49 = vld [vmem:[%s3180_s3 + $0x460] sm:$0xff] }
 0x111   : > { %1968 = vmatprep.subr.bf16.mxu0 %v1967_v54  ;;  %v720_v54 = vrot.slane %v2550_v0, 3 }
 0x112   : > { %1938 = vmatpush3.bf16.msra.mxu1 %v1937_v57  ;;  %v1470_v57 = vld [vmem:[%s3180_s3 + $0x518] sm:$0xff] }
 0x113   : > { %1940 = vmatprep.subr.bf16.mxu1 %v1939_v60  ;;  %v1487_v60 = vld [vmem:[%s3180_s3 + $0x5a0] sm:$0xff]  ;;  %v2021_v2 = vpack.c.bf16 %v1470_v57, %v1469_v56  ;;  %v1480_v56 = vld [vmem:[%s3180_s3 + $0x568] sm:$0xff] }
 0x114   : > { %1970 = vmatpush3.bf16.msra.mxu0 %v1969_v63  ;;  %v1439_v63 = vld [vmem:[%s3180_s3 + $0x420] sm:$0xff]  ;;  %v2023_v6 = vpack.c.bf16 %v1488_v61, %v1487_v60  ;;  %v2011_v60 = vpack.c.bf16 %v1466_v53, %v1465_v52  ;;  %v1449_v61 = vld [vmem:[%s3180_s3 + $0x470] sm:$0xff] }
 0x115   : > { %1972 = vmatprep.subr.bf16.mxu0 %v1971_v3  ;;  %v1457_v3 = vld [vmem:[%s3180_s3 + $0x4b0] sm:$0xff]  ;;  %v1993_v9 = vpack.c.bf16 %v1440_v1, %v1439_v63  ;;  %v1515_v1 = vld [vmem:[%s3180_s3 + $0x680] sm:$0xff] }
 0x116   : > { %1942 = vmatpush3.bf16.msra.mxu1 %v1941_v7  ;;  %v1471_v7 = vld [vmem:[%s3180_s3 + $0x520] sm:$0xff]  ;;  %v1995_v12 = vpack.c.bf16 %v1458_v5, %v1457_v3  ;;  %v1481_v5 = vld [vmem:[%s3180_s3 + $0x570] sm:$0xff] }
 0x117   : > { %1944 = vmatprep.subr.bf16.mxu1 %v1943_v10  ;;  %v1489_v10 = vld [vmem:[%s3180_s3 + $0x5b0] sm:$0xff]  ;;  %v2025_v15 = vpack.c.bf16 %v1472_v8, %v1471_v7  ;;  %v1547_v8 = vld [vmem:[%s3180_s3 + $0x780] sm:$0xff] }
 0x118   : > { %1974 = vmatpush3.bf16.msra.mxu0 %v1973_v13  ;;  %v1441_v13 = vld [vmem:[%s3180_s3 + $0x430] sm:$0xff]  ;;  %v2027_v18 = vpack.c.bf16 %v1490_v11, %v1489_v10  ;;  %v1499_v11 = vld [vmem:[%s3180_s3 + $0x600] sm:$0xff] }
 0x119   : > { %1976 = vmatprep.subr.bf16.mxu0 %v1975_v16  ;;  %v1459_v16 = vld [vmem:[%s3180_s3 + $0x4c0] sm:$0xff]  ;;  %v1997_v21 = vpack.c.bf16 %v1442_v14, %v1441_v13  ;;  %v1517_v14 = vld [vmem:[%s3180_s3 + $0x690] sm:$0xff] }
 0x11a   : > { %1946 = vmatpush3.bf16.msra.mxu1 %v1945_v19  ;;  %v1473_v19 = vld [vmem:[%s3180_s3 + $0x530] sm:$0xff]  ;;  %v1999_v24 = vpack.c.bf16 %v1460_v17, %v1459_v16  ;;  %v1531_v17 = vld [vmem:[%s3180_s3 + $0x700] sm:$0xff] }
 0x11b   : > { %1948 = vmatprep.subr.bf16.mxu1 %v1947_v22  ;;  %v1491_v22 = vld [vmem:[%s3180_s3 + $0x5c0] sm:$0xff]  ;;  %v2029_v27 = vpack.c.bf16 %v1474_v20, %v1473_v19  ;;  %v1549_v20 = vld [vmem:[%s3180_s3 + $0x790] sm:$0xff] }
 0x11c   : > { %1978 = vmatpush3.bf16.msra.mxu0 %v1977_v25  ;;  %v1443_v25 = vld [vmem:[%s3180_s3 + $0x440] sm:$0xff]  ;;  %v2031_v30 = vpack.c.bf16 %v1492_v23, %v1491_v22  ;;  %v828_v22 = vrot.slane %v2550_v0, 4 }
 0x11d   : > { %1980 = vmatprep.subr.bf16.mxu0 %v1979_v28  ;;  %v1461_v28 = vld [vmem:[%s3180_s3 + $0x4d0] sm:$0xff]  ;;  %v2001_v33 = vpack.c.bf16 %v1444_v26, %v1443_v25  ;;  %v1502_v25 = vld [vmem:[%s3180_s3 + $0x618] sm:$0xff]  ;;  %v1045_v26 = vrot.slane %v2561_v4, 6  ;;  %v1523_v53 = vld [vmem:[%s3180_s3 + $0x6c0] sm:$0xff] }
 0x11e   : > { %1950 = vmatpush3.bf16.msra.mxu1 %v1949_v31  ;;  %v1475_v31 = vld [vmem:[%s3180_s3 + $0x540] sm:$0xff]  ;;  %v2003_v36 = vpack.c.bf16 %v1462_v29, %v1461_v28  ;;  %v1520_v29 = vld [vmem:[%s3180_s3 + $0x6a8] sm:$0xff] }
 0x11f   : > { %1984 = vmatprep.subr.bf16.mxu1 %v1983_v34  ;;  %v1493_v34 = vld [vmem:[%s3180_s3 + $0x5d0] sm:$0xff]  ;;  %v2033_v39 = vpack.c.bf16 %v1476_v32, %v1475_v31  ;;  %v1519_v28 = vld [vmem:[%s3180_s3 + $0x6a0] sm:$0xff] }
 0x120   : > { %1982 = vmatpush3.bf16.msra.mxu0 %v1981_v37  ;;  %v1445_v37 = vld [vmem:[%s3180_s3 + $0x450] sm:$0xff]  ;;  %v2035_v42 = vpack.c.bf16 %v1494_v35, %v1493_v34  ;;  %v1153_v34 = vrot.slane %v2561_v4, 7  ;;  %v1504_v4 = vld [vmem:[%s3180_s3 + $0x628] sm:$0xff] }
 0x121   : > { %681 = vmatmul.mubr.f32.vlgmr.msra.gmra.mrb[2].mxu1 %v612_v46  ;;  %2016 = vmatprep.subr.bf16.mxu0 %v2015_v40  ;;  %v1463_v40 = vld [vmem:[%s3180_s3 + $0x4e0] sm:$0xff]  ;;  %v2005_v45 = vpack.c.bf16 %v1446_v38, %v1445_v37  ;;  %v1533_v32 = vld [vmem:[%s3180_s3 + $0x710] sm:$0xff]  ;;  %v1552_v37 = vld [vmem:[%s3180_s3 + $0x7a8] sm:$0xff]  ;;  %v2055_v38 = vpack.c.bf16 %v1520_v29, %v1519_v28 }
 0x122   : > { %1986 = vmatpush3.bf16.msra.mxu1 %v1985_v43  ;;  %896 = vmatprep.mubr.f32.mxu1 %v829_v50  ;;  %v1477_v43 = vld [vmem:[%s3180_s3 + $0x550] sm:$0xff]  ;;  %v1495_v46 = vld [vmem:[%s3180_s3 + $0x5e0] sm:$0xff]  ;;  %v2007_v48 = vpack.c.bf16 %v1464_v41, %v1463_v40  ;;  %v1448_v50 = vld [vmem:[%s3180_s3 + $0x468] sm:$0xff] }
 0x123   : > { %789 = vmatmul.mubr.f32.vlgmr.msra.gmra.mrb[4].mxu0 %v720_v54  ;;  %1988 = vmatprep.subr.bf16.mxu1 %v1987_v47  ;;  %v1496_v47 = vld [vmem:[%s3180_s3 + $0x5e8] sm:$0xff]  ;;  %v2009_v57 = vpack.c.bf16 %v1448_v50, %v1447_v49  ;;  %v1521_v41 = vld [vmem:[%s3180_s3 + $0x6b0] sm:$0xff]  ;;  %v1530_v28 = vld [vmem:[%s3180_s3 + $0x6f8] sm:$0xff] }
 0x124   : > { %2018 = vmatpush3.bf16.msra.mxu0 %v2017_v51  ;;  %1004 = vmatprep.mubr.f32.mxu0 %v937_v58  ;;  %v2037_v51 = vpack.c.bf16 %v1478_v44, %v1477_v43  ;;  %v2039_v54 = vpack.c.bf16 %v1496_v47, %v1495_v46  ;;  %v1497_v58 = vld [vmem:[%s3180_s3 + $0x5f0] sm:$0xff]  ;;  %v1535_v44 = vld [vmem:[%s3180_s3 + $0x720] sm:$0xff] }
 0x125   : > { %2020 = vmatprep.subr.bf16.mxu0 %v2019_v55  ;;  %v1479_v55 = vld [vmem:[%s3180_s3 + $0x560] sm:$0xff]  ;;  %v1553_v47 = vld [vmem:[%s3180_s3 + $0x7b0] sm:$0xff] }
 0x126   : > { %1990 = vmatpush3.bf16.msra.mxu1 %v1989_v59  ;;  %v1498_v59 = vld [vmem:[%s3180_s3 + $0x5f8] sm:$0xff]  ;;  %v2041_v63 = vpack.c.bf16 %v1480_v56, %v1479_v55  ;;  %v1505_v50 = vld [vmem:[%s3180_s3 + $0x630] sm:$0xff] }
 0x127   : > { %1992 = vmatprep.subr.bf16.mxu1 %v1991_v62  ;;  %v1450_v62 = vld [vmem:[%s3180_s3 + $0x478] sm:$0xff]  ;;  %v2043_v3 = vpack.c.bf16 %v1498_v59, %v1497_v58  ;;  %v1537_v56 = vld [vmem:[%s3180_s3 + $0x730] sm:$0xff]  ;;  %v1555_v59 = vld [vmem:[%s3180_s3 + $0x7c0] sm:$0xff] }
 0x128   : > { %2022 = vmatpush3.bf16.msra.mxu0 %v2021_v2  ;;  %v1516_v2 = vld [vmem:[%s3180_s3 + $0x688] sm:$0xff]  ;;  %v2013_v7 = vpack.c.bf16 %v1450_v62, %v1449_v61  ;;  %v1507_v62 = vld [vmem:[%s3180_s3 + $0x640] sm:$0xff] }
 0x129   : > { %2024 = vmatprep.subr.bf16.mxu0 %v2023_v6  ;;  %v1482_v6 = vld [vmem:[%s3180_s3 + $0x578] sm:$0xff]  ;;  %v2047_v10 = vpack.c.bf16 %v1516_v2, %v1515_v1  ;;  %v1525_v2 = vld [vmem:[%s3180_s3 + $0x6d0] sm:$0xff] }
 0x12a   : > { %1994 = vmatpush3.bf16.msra.mxu1 %v1993_v9  ;;  %v1548_v9 = vld [vmem:[%s3180_s3 + $0x788] sm:$0xff]  ;;  %v2045_v13 = vpack.c.bf16 %v1482_v6, %v1481_v5  ;;  %v1539_v6 = vld [vmem:[%s3180_s3 + $0x740] sm:$0xff] }
 0x12b   : > { %1996 = vmatprep.subr.bf16.mxu1 %v1995_v12  ;;  %v1500_v12 = vld [vmem:[%s3180_s3 + $0x608] sm:$0xff]  ;;  %v2079_v16 = vpack.c.bf16 %v1548_v9, %v1547_v8  ;;  %v1557_v9 = vld [vmem:[%s3180_s3 + $0x7d0] sm:$0xff] }
 0x12c   : > { %2026 = vmatpush3.bf16.msra.mxu0 %v2025_v15  ;;  %v1518_v15 = vld [vmem:[%s3180_s3 + $0x698] sm:$0xff]  ;;  %v2049_v19 = vpack.c.bf16 %v1500_v12, %v1499_v11  ;;  %v1509_v12 = vld [vmem:[%s3180_s3 + $0x650] sm:$0xff] }
 0x12d   : > { %2028 = vmatprep.subr.bf16.mxu0 %v2027_v18  ;;  %v1532_v18 = vld [vmem:[%s3180_s3 + $0x708] sm:$0xff]  ;;  %v2051_v23 = vpack.c.bf16 %v1518_v15, %v1517_v14  ;;  %v1527_v15 = vld [vmem:[%s3180_s3 + $0x6e0] sm:$0xff] }
 0x12e   : > { %1998 = vmatpush3.bf16.msra.mxu1 %v1997_v21  ;;  %v1550_v21 = vld [vmem:[%s3180_s3 + $0x798] sm:$0xff] }
 0x12f   : > { %2000 = vmatprep.subr.bf16.mxu1 %v1999_v24  ;;  %v1501_v24 = vld [vmem:[%s3180_s3 + $0x610] sm:$0xff]  ;;  %v2083_v31 = vpack.c.bf16 %v1550_v21, %v1549_v20  ;;  %v1559_v21 = vld [vmem:[%s3180_s3 + $0x7e0] sm:$0xff] }
 0x130   : > { %2030 = vmatpush3.bf16.msra.mxu0 %v2029_v27  ;;  %v2081_v27 = vpack.c.bf16 %v1532_v18, %v1531_v17  ;;  %v2053_v35 = vpack.c.bf16 %v1502_v25, %v1501_v24  ;;  %v1541_v18 = vld [vmem:[%s3180_s3 + $0x750] sm:$0xff]  ;;  %v1511_v24 = vld [vmem:[%s3180_s3 + $0x660] sm:$0xff]  ;;  %v1512_v25 = vld [vmem:[%s3180_s3 + $0x668] sm:$0xff] }
 0x131   : > { %2032 = vmatprep.subr.bf16.mxu0 %v2031_v30  ;;  %v936_v30 = vrot.slane %v2550_v0, 5 }
 0x132   : > { %2002 = vmatpush3.bf16.msra.mxu1 %v2001_v33  ;;  %v1534_v33 = vld [vmem:[%s3180_s3 + $0x718] sm:$0xff] }
 0x133   : > { %2004 = vmatprep.subr.bf16.mxu1 %v2003_v36  ;;  %v1551_v36 = vld [vmem:[%s3180_s3 + $0x7a0] sm:$0xff]  ;;  %v2085_v40 = vpack.c.bf16 %v1534_v33, %v1533_v32  ;;  %v2073_v32 = vpack.c.bf16 %v1512_v25, %v1511_v24  ;;  %v1561_v33 = vld [vmem:[%s3180_s3 + $0x7f0] sm:$0xff] }
 0x134   : > { %2034 = vmatpush3.bf16.msra.mxu0 %v2033_v39  ;;  %v1503_v39 = vld [vmem:[%s3180_s3 + $0x620] sm:$0xff]  ;;  %v2087_v43 = vpack.c.bf16 %v1552_v37, %v1551_v36  ;;  %v1513_v36 = vld [vmem:[%s3180_s3 + $0x670] sm:$0xff]  ;;  %v1514_v37 = vld [vmem:[%s3180_s3 + $0x678] sm:$0xff] }
 0x135   : > { %2036 = vmatprep.subr.bf16.mxu0 %v2035_v42  ;;  %v1522_v42 = vld [vmem:[%s3180_s3 + $0x6b8] sm:$0xff]  ;;  %v2057_v46 = vpack.c.bf16 %v1504_v4, %v1503_v39  ;;  %v1545_v4 = vld [vmem:[%s3180_s3 + $0x770] sm:$0xff] }
 0x136   : > { %2006 = vmatpush3.bf16.msra.mxu1 %v2005_v45  ;;  %v1536_v45 = vld [vmem:[%s3180_s3 + $0x728] sm:$0xff]  ;;  %v2059_v49 = vpack.c.bf16 %v1522_v42, %v1521_v41  ;;  %v2077_v41 = vpack.c.bf16 %v1514_v37, %v1513_v36 }
 0x137   : > { %2008 = vmatprep.subr.bf16.mxu1 %v2007_v48  ;;  %v1554_v48 = vld [vmem:[%s3180_s3 + $0x7b8] sm:$0xff]  ;;  %v2089_v52 = vpack.c.bf16 %v1536_v45, %v1535_v44  ;;  %v1152_v44 = vrot.slane %v2550_v0, 7 }
 0x138   : > { %2038 = vmatpush3.bf16.msra.mxu0 %v2037_v51  ;;  %v1506_v51 = vld [vmem:[%s3180_s3 + $0x638] sm:$0xff]  ;;  %v2091_v55 = vpack.c.bf16 %v1554_v48, %v1553_v47 }
 0x139   : > { %2040 = vmatprep.subr.bf16.mxu0 %v2039_v54  ;;  %v1524_v54 = vld [vmem:[%s3180_s3 + $0x6c8] sm:$0xff]  ;;  %v2061_v58 = vpack.c.bf16 %v1506_v51, %v1505_v50 }
 0x13a   : > { %2010 = vmatpush3.bf16.msra.mxu1 %v2009_v57  ;;  %v1538_v57 = vld [vmem:[%s3180_s3 + $0x738] sm:$0xff]  ;;  %v2063_v61 = vpack.c.bf16 %v1524_v54, %v1523_v53 }
 0x13b   : > { %2012 = vmatprep.subr.bf16.mxu1 %v2011_v60  ;;  %v1556_v60 = vld [vmem:[%s3180_s3 + $0x7c8] sm:$0xff]  ;;  %v2093_v1 = vpack.c.bf16 %v1538_v57, %v1537_v56 }
 0x13c   : > { %2042 = vmatpush3.bf16.msra.mxu0 %v2041_v63  ;;  %v1508_v63 = vld [vmem:[%s3180_s3 + $0x648] sm:$0xff]  ;;  %v2095_v5 = vpack.c.bf16 %v1556_v60, %v1555_v59 }
 0x13d   : > { %2044 = vmatprep.subr.bf16.mxu0 %v2043_v3  ;;  %v1526_v3 = vld [vmem:[%s3180_s3 + $0x6d8] sm:$0xff]  ;;  %v2065_v8 = vpack.c.bf16 %v1508_v63, %v1507_v62 }
 0x13e   : > { %2014 = vmatpush3.bf16.msra.mxu1 %v2013_v7  ;;  %v1540_v7 = vld [vmem:[%s3180_s3 + $0x748] sm:$0xff]  ;;  %v2067_v11 = vpack.c.bf16 %v1526_v3, %v1525_v2 }
 0x13f   : > { %2048 = vmatprep.subr.bf16.mxu1 %v2047_v10  ;;  %v1558_v10 = vld [vmem:[%s3180_s3 + $0x7d8] sm:$0xff]  ;;  %v2097_v14 = vpack.c.bf16 %v1540_v7, %v1539_v6 }
 0x140   : > { %2046 = vmatpush3.bf16.msra.mxu0 %v2045_v13  ;;  %v1510_v13 = vld [vmem:[%s3180_s3 + $0x658] sm:$0xff]  ;;  %v2099_v17 = vpack.c.bf16 %v1558_v10, %v1557_v9 }
 0x141   : > { %897 = vmatmul.mubr.f32.vlgmr.msra.gmra.mrb[4].mxu1 %v828_v22  ;;  %2080 = vmatprep.subr.bf16.mxu0 %v2079_v16  ;;  %v1528_v16 = vld [vmem:[%s3180_s3 + $0x6e8] sm:$0xff]  ;;  %v2069_v20 = vpack.c.bf16 %v1510_v13, %v1509_v12 }
 0x142   : > { %2050 = vmatpush3.bf16.msra.mxu1 %v2049_v19  ;;  %1112 = vmatprep.mubr.f32.mxu1 %v1045_v26  ;;  %v1542_v19 = vld [vmem:[%s3180_s3 + $0x758] sm:$0xff]  ;;  %v1560_v22 = vld [vmem:[%s3180_s3 + $0x7e8] sm:$0xff] }
 0x143   : > { %1005 = vmatmul.mubr.f32.vlgmr.msra.gmra.mrb[6].mxu0 %v936_v30  ;;  %2052 = vmatprep.subr.bf16.mxu1 %v2051_v23  ;;  %v2071_v23 = vpack.c.bf16 %v1528_v16, %v1527_v15  ;;  %v2101_v26 = vpack.c.bf16 %v1542_v19, %v1541_v18  ;;  %v2103_v29 = vpack.c.bf16 %v1560_v22, %v1559_v21  ;;  %v1543_v30 = vld [vmem:[%s3180_s3 + $0x760] sm:$0xff] }
 0x144   : > { %2082 = vmatpush3.bf16.msra.mxu0 %v2081_v27  ;;  %1220 = vmatprep.mubr.f32.mxu0 %v1153_v34  ;;  %v1529_v27 = vld [vmem:[%s3180_s3 + $0x6f0] sm:$0xff]  ;;  %v1562_v34 = vld [vmem:[%s3180_s3 + $0x7f8] sm:$0xff] }
 0x145   : > { %2084 = vmatprep.subr.bf16.mxu0 %v2083_v31  ;;  %v1544_v31 = vld [vmem:[%s3180_s3 + $0x768] sm:$0xff]  ;;  %v2107_v39 = vpack.c.bf16 %v1562_v34, %v1561_v33 }
 0x146   : > { %2054 = vmatpush3.bf16.msra.mxu1 %v2053_v35  ;;  %v2075_v35 = vpack.c.bf16 %v1530_v28, %v1529_v27 }
 0x147   : > { %2056 = vmatprep.subr.bf16.mxu1 %v2055_v38  ;;  %v2105_v38 = vpack.c.bf16 %v1544_v31, %v1543_v30 }
 0x148   : > { %2086 = vmatpush3.bf16.msra.mxu0 %v2085_v40  ;;  %v1546_v40 = vld [vmem:[%s3180_s3 + $0x778] sm:$0xff] }
 0x149   : > { %2088 = vmatprep.subr.bf16.mxu0 %v2087_v43  ;;  %v2109_v42 = vpack.c.bf16 %v1546_v40, %v1545_v4  ;;  %v1044_v43 = vrot.slane %v2550_v0, 6 }
 0x14a   : > { %2058 = vmatpush3.bf16.msra.mxu1 %v2057_v46  ;;  %v365_v46 = vld [vmem:[%s3181_s4] sm:$0x1] }
 0x14b   : > { %2060 = vmatprep.subr.bf16.mxu1 %v2059_v49 }
 0x14c   : > { %2090 = vmatpush3.bf16.msra.mxu0 %v2089_v52 }
 0x14d   : > { %2092 = vmatprep.subr.bf16.mxu0 %v2091_v55 }
 0x14e   : > { %2062 = vmatpush3.bf16.msra.mxu1 %v2061_v58 }
 0x14f   : > { %2064 = vmatprep.subr.bf16.mxu1 %v2063_v61 }
 0x150   : > { %2094 = vmatpush3.bf16.msra.mxu0 %v2093_v1 }
 0x151   : > { %2096 = vmatprep.subr.bf16.mxu0 %v2095_v5 }
 0x152   : > { %2066 = vmatpush3.bf16.msra.mxu1 %v2065_v8 }
 0x153   : > { %2068 = vmatprep.subr.bf16.mxu1 %v2067_v11 }
 0x154   : > { %2098 = vmatpush3.bf16.msra.mxu0 %v2097_v14 }
 0x155   : > { %2100 = vmatprep.subr.bf16.mxu0 %v2099_v17 }
 0x156   : > { %2070 = vmatpush3.bf16.msra.mxu1 %v2069_v20 }
 0x157   : > { %2072 = vmatprep.subr.bf16.mxu1 %v2071_v23 }
 0x158   : > { %2102 = vmatpush3.bf16.msra.mxu0 %v2101_v26 }
 0x159   : > { %2104 = vmatprep.subr.bf16.mxu0 %v2103_v29 }
 0x15a   : > { %2074 = vmatpush3.bf16.msra.mxu1 %v2073_v32 }
 0x15b   : > { %2076 = vmatprep.subr.bf16.mxu1 %v2075_v35 }
 0x15c   : > { %2106 = vmatpush3.bf16.msra.mxu0 %v2105_v38 }
 0x15d   : > { %2108 = vmatprep.subr.bf16.mxu0 %v2107_v39 }
 0x15e   : > { %2078 = vmatpush3.bf16.msra.mxu1 %v2077_v41 }
 0x160   : > { %2110 = vmatpush3.bf16.msra.mxu0 %v2109_v42 }
 0x161   : > { %1113 = vmatmul.mubr.f32.vlgmr.msra.gmra.mrb[6].mxu1 %v1044_v43 }
 0x163   : > { %1221 = vmatmul.mubr.f32.vlgmr.msra.gmra.mrb[8].mxu0 %v1152_v44 }
 0x1d4   : > { %v1599_v45 = vpop.f32.mrb[0].mxu1 }
 0x1d5   : > { %v1600_v47 = vpop.f32.mrb[1].mxu1 }
 0x1d6   : > { %v1601_v48 = vadd.f32 %v1600_v47, %v1599_v45  ;;  %v1634_v49 = vpop.f32.mrb[2].mxu0 }
 0x1d7   : > { %v1635_v50 = vpop.f32.mrb[3].mxu0 }
 0x1d8   : > { %v468_v51 = vadd.f32 %v1601_v48, %v365_v46  ;;  %v1636_v52 = vadd.f32 %v1635_v50, %v1634_v49 }
 0x1da   : > { %v578_v53 = vadd.f32 %v1636_v52, %v468_v51 }
 0x1f4   : > { %v1669_v54 = vpop.f32.mrb[2].mxu1 }
 0x1f5   : > { %v1670_v55 = vpop.f32.mrb[3].mxu1 }
 0x1f6   : > { %v1671_v56 = vadd.f32 %v1670_v55, %v1669_v54  ;;  %v1704_v57 = vpop.f32.mrb[4].mxu0 }
 0x1f7   : > { %v1705_v58 = vpop.f32.mrb[5].mxu0 }
 0x1f8   : > { %v686_v0 = vadd.f32 %v1671_v56, %v578_v53  ;;  %v1706_v59 = vadd.f32 %v1705_v58, %v1704_v57 }
 0x1fa   : > { %v794_v60 = vadd.f32 %v1706_v59, %v686_v0 }
 0x214   : > { %v1739_v61 = vpop.f32.mrb[4].mxu1 }
 0x215   : > { %v1740_v62 = vpop.f32.mrb[5].mxu1 }
 0x216   : > { %v1741_v63 = vadd.f32 %v1740_v62, %v1739_v61  ;;  %v1774_v1 = vpop.f32.mrb[6].mxu0 }
 0x217   : > { %v1775_v2 = vpop.f32.mrb[7].mxu0 }
 0x218   : > { %v902_v3 = vadd.f32 %v1741_v63, %v794_v60  ;;  %v1776_v5 = vadd.f32 %v1775_v2, %v1774_v1 }
 0x21a   : > { %v1010_v6 = vadd.f32 %v1776_v5, %v902_v3 }
 0x234   : > { %v1809_v7 = vpop.f32.mrb[6].mxu1 }
 0x235   : > { %v1810_v8 = vpop.f32.mrb[7].mxu1 }
 0x236   : > { %v1811_v9 = vadd.f32 %v1810_v8, %v1809_v7  ;;  %v1844_v10 = vpop.f32.mrb[8].mxu0 }
 0x237   : > { %v1845_v11 = vpop.f32.mrb[9].mxu0 }
 0x238   : > { %v1118_v12 = vadd.f32 %v1811_v9, %v1010_v6  ;;  %v1846_v13 = vadd.f32 %v1845_v11, %v1844_v10 }
 0x23a   : > { %v1226_v14 = vadd.f32 %v1846_v13, %v1118_v12 }
 0x23c   : > { %1227 = vst [vmem:[%s251_s15] sm:$0x1] %v1226_v14 }
 0x23d   : > { %2167 = shalt.err (!%p2164_p3)
}
 0x23e   : > { %s2168_s19 = scalar_lea.hbm %s3135_s29, 16  ;;  %s2172_s28 = scalar_lea.hbm %s3183_s6, 32 }
 0x23f   : > { %p2169_p4 = scmp.ne.s32.totalorder %s3135_s29, %s2168_s19  ;;  %p2173_p9 = scmp.lt.u32.totalorder %s3135_s29, %s3183_s6 }
 0x240   : > { %p2174_p10 = scmp.lt.u32.totalorder %s2172_s28, %s2168_s19  ;;  %p2176_p12 = scmp.lt.u32.totalorder %s2168_s19, %s3135_s29 }
 0x241   : > { %p2170_p7 = pnand %p2169_p4, %p2294_p5 }
 0x242   : > { %p2175_p11 = por %p2174_p10, %p2173_p9 }
 0x243   : > { %p2171_p8 = pneg %p2170_p7 }
 0x244   : > { %p2177_p13 = por %p2176_p12, %p2175_p11 }
 0x246   : > { %p2178_p0 = pnand %p2177_p13, %p2171_p8 }
 0x248   : > { %2181 = shalt.err (!%p2178_p0)
}
 0x249   : > { %2112 = dma.vmem_to_hbm [thread:$0]  (%p2294_p5), %s3137_s11, 16, %s3135_s29, %s1234_s14  }
 0x24a PF: > { %p2118_p1 = scmp.ge.s32.totalorder %s2216_s24, 2  ;;  %s1269_s15 = sand.u32 1, %s2204_s21  }
 0x24b   : > { %s1270_s12 = scalar_lea.sflag [#allocation3], %s1269_s15 }
 0x24c   : > { %p2115_p2 = pnand %p2118_p1, %p2298_p6 }
 0x24e   : > { %2199 = dma.done.wait (!%p2115_p2), %s1270_s12, 16  }
 0x24f   : > { %2201 = vsyncadd (!%p2115_p2), %s1270_s12, 4294967280  ;;  %p17_p3 = scmp.ge.s32.totalorder %s2281_s27, 4   ;;  %s3186_s21 = smov %s2208_s22 }
 0x250   : > { %s3187_s22 = smov %s2212_s23  ;;  %s3188_s23 = smov %s2292_s30 }
 0x251   : > { %s3189_s24 = smov %s2281_s27  ;;  %19 = sbr.rel (!%p17_p3) target bundleno = 3 (0x3), region = 94 }
 0x258   :  { %1274 = vsyncpa [#allocation3], 1 }
 0x259   :  { %1276 = vsyncpa [#allocation3 + $0x1], 1 }

</bundles_post_ra>
